<compile_context>
chip_gen: v7x
topology: tpu7x:2x2x1
jax: 0.10.0
libtpu: 0.0.40
codegen_flags: <defaults>
</compile_context>

<pallas_src>
import functools

import jax
import jax.numpy as jnp
from jax.experimental import pallas as pl
from jax.experimental.pallas import tpu as pltpu


def _round_up(x, m):
    return ((x + m - 1) // m) * m


def _focal_loss_kernel(alpha_ref, x_ref, tgt_ref, out_ref, *, gamma):
    # alpha_ref: (C,)                f32 per-class weights (SMEM, scalar prefetch)
    # x_ref:     (C, tile_rows, 128) f32 logits, batch on (sublane, lane)
    # tgt_ref:   (tile_rows, 128)    int32 target class ids
    # out_ref:   (8, 128)            f32 per-core partial sums (accumulated)
    ti = pl.program_id(1)

    @pl.when(ti == 0)
    def _init():
        out_ref[...] = jnp.zeros_like(out_ref)

    c, tr, _ = x_ref.shape
    tgt = tgt_ref[...]                                  # (tr, 128) int32

    # One lane/sublane-dense slab per class; unrolled over C (C is 2..4).
    rows = [x_ref[k].astype(jnp.float32) for k in range(c)]

    # Class-axis max: pure elementwise over the C slabs (VPU only).
    m = rows[0]
    for r in rows[1:]:
        m = jnp.maximum(m, r)

    # Class-axis sum(exp(x - m)) + selects of the target logit / exp / alpha.
    s = jnp.zeros_like(m)
    x_sel = jnp.zeros_like(m)
    e_sel = jnp.zeros_like(m)
    a_sel = jnp.zeros_like(m)
    for k, r in enumerate(rows):
        e_k = jnp.exp(r - m)
        s = s + e_k
        cmp = tgt == k
        x_sel = jnp.where(cmp, r, x_sel)
        e_sel = jnp.where(cmp, e_k, e_sel)
        a_sel = jnp.where(cmp, alpha_ref[k], a_sel)

    # p = softmax(x)[target], log_p = log(p); only C exps + 1 log + 1 approx
    # reciprocal per sample (reciprocal rides the EUP slot, nearly free).
    inv_s = pl.reciprocal(s, approx=True)
    p = e_sel * inv_s
    log_p = (x_sel - m) - jnp.log(s)
    om = jnp.maximum(1.0 - p, 0.0)        # clamp tiny negatives from approx recip
    if gamma == 2.0:
        focal = om * om                   # module default: square, no pow
    else:
        focal = jnp.power(om, gamma)
    loss = a_sel * focal * (-log_p)       # (tr, 128), padded rows contribute 0

    # Fold sublane groups of 8 and accumulate into the per-core output block.
    out_ref[...] += jnp.sum(loss.reshape(tr // 8, 8, 128), axis=0)


def focal_loss(inputs, targets, alpha, gamma=2.0, size_average=False,
               max_tile_rows=512, num_core_splits=2):
    """Focal loss forward (matches the PyTorch FocalLoss.forward).

    inputs:  (N, C) logits
    targets: (N,)   int class ids
    alpha:   (C, 1) or (C,) per-class weights
    """
    n, c = inputs.shape

    # --- batch geometry -----------------------------------------------------
    n_rows = pl.cdiv(n, 128)                              # rows of 128 samples
    splits = max(1, int(num_core_splits))
    tile_rows = max(8, _round_up(min(int(max_tile_rows), pl.cdiv(n_rows, splits)), 8))
    tiles_per_core = pl.cdiv(n_rows, splits * tile_rows)
    n_rows_pad = splits * tiles_per_core * tile_rows
    n_pad = n_rows_pad * 128

    # --- wrapper-side data prep --------------------------------------------
    x = inputs.astype(jnp.float32)
    t = targets.astype(jnp.int32)
    if n_pad > n:
        # Zero-loss padding: target-class (class 0) logit = 1e4 -> p = 1,
        # log_p = 0 exactly, so padded samples add exactly 0 to the sum.
        pad_x = jnp.zeros((n_pad - n, c), jnp.float32).at[:, 0].set(1e4)
        x = jnp.concatenate([x, pad_x], axis=0)
        t = jnp.concatenate([t, jnp.zeros((n_pad - n,), jnp.int32)], axis=0)

    # Lane-dense, sublane-dense layout: (C, n_rows_pad, 128).
    # TODO(synk): have the producer emit this layout to kill the relayout pass.
    x_cnr = x.T.reshape(c, n_rows_pad, 128)
    tgt2 = t.reshape(n_rows_pad, 128)
    alpha_flat = alpha.reshape(-1).astype(jnp.float32)    # (C,)

    # --- VMEM budget for the double-buffered blocks --------------------------
    block_bytes = (c + 1) * tile_rows * 128 * 4
    vmem_limit = int(min(96 << 20, max(16 << 20, 3 * block_bytes + (4 << 20))))

    kernel = functools.partial(_focal_loss_kernel, gamma=float(gamma))

    out = pl.pallas_call(
        kernel,
        out_shape=jax.ShapeDtypeStruct((splits * 8, 128), jnp.float32),
        grid_spec=pltpu.PrefetchScalarGridSpec(
            num_scalar_prefetch=1,                         # alpha -> SMEM
            grid=(splits, tiles_per_core),
            in_specs=[
                pl.BlockSpec((c, tile_rows, 128),
                             lambda ci, ti, a: (0, ci * tiles_per_core + ti, 0)),
                pl.BlockSpec((tile_rows, 128),
                             lambda ci, ti, a: (ci * tiles_per_core + ti, 0)),
            ],
            out_specs=pl.BlockSpec((8, 128), lambda ci, ti, a: (ci, 0)),
        ),
        compiler_params=pltpu.CompilerParams(
            dimension_semantics=("parallel", "arbitrary"),
            vmem_limit_bytes=vmem_limit,
        ),
    )(alpha_flat, x_cnr, tgt2)

    total = jnp.sum(out)
    if size_average:
        total = total / n
    return total


def focal_loss_ref(inputs, targets, alpha, gamma=2.0, size_average=False):
    # Pure-JAX reference mirroring the PyTorch forward.
    n, c = inputs.shape
    p = jax.nn.softmax(inputs.astype(jnp.float32), axis=1)
    mask = jax.nn.one_hot(targets, c, dtype=jnp.float32)
    probs = jnp.sum(p * mask, axis=1, keepdims=True)
    alpha_sel = alpha.reshape(-1)[targets].reshape(-1, 1).astype(jnp.float32)
    log_p = jnp.log(probs)
    batch_loss = -alpha_sel * jnp.power(1.0 - probs, gamma) * log_p
    return batch_loss.mean() if size_average else batch_loss.sum()


if __name__ == "__main__":
    key = jax.random.PRNGKey(0)

    # --- Case 1: module defaults (class_num=2, alpha=ones, sum reduction) ---
    class_num, batch = 2, 8
    k_x, k_t, key = jax.random.split(key, 3)
    inputs = jax.random.normal(k_x, (batch, class_num), dtype=jnp.float32)
    targets = jax.random.randint(k_t, (batch,), 0, class_num, dtype=jnp.int32)
    alpha = jnp.ones((class_num, 1), dtype=jnp.float32)

    loss = jax.block_until_ready(focal_loss(inputs, targets, alpha))
    ref = focal_loss_ref(inputs, targets, alpha)
    assert jnp.allclose(loss, ref, rtol=2e-3, atol=1e-3), (loss, ref)

    # size_average=True path on the same data.
    loss_avg = jax.block_until_ready(
        focal_loss(inputs, targets, alpha, size_average=True))
    ref_avg = focal_loss_ref(inputs, targets, alpha, size_average=True)
    assert jnp.allclose(loss_avg, ref_avg, rtol=2e-3, atol=1e-3), (loss_avg, ref_avg)

    # --- Case 2: multi-tile grid (2 core-slices x several tiles), ragged
    #             batch, non-uniform alpha, small forced tile size ------------
    class_num2, batch2 = 4, 5000
    k_x2, k_t2, key = jax.random.split(key, 3)
    inputs2 = jax.random.normal(k_x2, (batch2, class_num2), dtype=jnp.float32)
    targets2 = jax.random.randint(k_t2, (batch2,), 0, class_num2,
                                  dtype=jnp.int32)
    alpha2 = (0.25 * jnp.arange(1, class_num2 + 1,
                                dtype=jnp.float32)).reshape(class_num2, 1)

    loss2 = jax.block_until_ready(
        focal_loss(inputs2, targets2, alpha2, max_tile_rows=8))
    ref2 = focal_loss_ref(inputs2, targets2, alpha2)
    assert jnp.allclose(loss2, ref2, rtol=2e-3, atol=2e-3), (loss2, ref2)

    # Same data, default (large) tile to exercise the big-block path.
    loss3 = jax.block_until_ready(focal_loss(inputs2, targets2, alpha2))
    assert jnp.allclose(loss3, ref2, rtol=2e-3, atol=2e-3), (loss3, ref2)

    print("KERNEL_OK")
</pallas_src>

<mosaic_0001>
module attributes {stable_mosaic.version = 11 : i64} {
  func.func @_focal_loss_kernel(%arg0: i32, %arg1: i32, %arg2: memref<2xf32, #tpu.memory_space<smem>>, %arg3: memref<2x8x128xf32, #tpu.memory_space<vmem>>, %arg4: memref<8x128xi32, #tpu.memory_space<vmem>>, %arg5: memref<8x128xf32, #tpu.memory_space<vmem>>) attributes {dimension_semantics = [#tpu.dimension_semantics<parallel>, #tpu.dimension_semantics<arbitrary>], iteration_bounds = array<i64: 2, 1>, scalar_prefetch = 1 : i64, scratch_operands = 0 : i64, tpu.core_type = #tpu.core_type<tc>, window_params = [{transform_indices = @transform_0, window_bounds = array<i64: 2, 8, 128>}, {transform_indices = @transform_1, window_bounds = array<i64: 8, 128>}, {transform_indices = @transform_2, window_bounds = array<i64: 8, 128>}]} {
    %c0_i32 = arith.constant 0 : i32
    %0 = arith.cmpi eq, %arg1, %c0_i32 : i32
    %1 = arith.extui %0 : i1 to i32
    %c0_i32_0 = arith.constant 0 : i32
    %2 = arith.cmpi ne, %1, %c0_i32_0 : i32
    scf.if %2 {
      %cst_21 = arith.constant 0.000000e+00 : f32
      %52 = vector.broadcast %cst_21 : f32 to vector<8x128xf32>
      %c0_22 = arith.constant 0 : index
      %c0_23 = arith.constant 0 : index
      %53 = vector.load %arg5[%c0_22, %c0_23] : memref<8x128xf32, #tpu.memory_space<vmem>>, vector<8x128xf32>
      tpu.vector_store %arg5[%c0_22, %c0_23], %52 {strides = array<i32>} : memref<8x128xf32, #tpu.memory_space<vmem>>, vector<8x128xf32>,
    } else {
    }
    %c0 = arith.constant 0 : index
    %c0_1 = arith.constant 0 : index
    %3 = vector.load %arg4[%c0, %c0_1] : memref<8x128xi32, #tpu.memory_space<vmem>>, vector<8x128xi32>
    %c0_2 = arith.constant 0 : index
    %c0_3 = arith.constant 0 : index
    %c0_4 = arith.constant 0 : index
    %4 = vector.load %arg3[%c0_2, %c0_3, %c0_4] : memref<2x8x128xf32, #tpu.memory_space<vmem>>, vector<1x8x128xf32>
    %5 = vector.shape_cast %4 : vector<1x8x128xf32> to vector<8x128xf32>
    %c1 = arith.constant 1 : index
    %c0_5 = arith.constant 0 : index
    %c0_6 = arith.constant 0 : index
    %6 = vector.load %arg3[%c1, %c0_5, %c0_6] : memref<2x8x128xf32, #tpu.memory_space<vmem>>, vector<1x8x128xf32>
    %7 = vector.shape_cast %6 : vector<1x8x128xf32> to vector<8x128xf32>
    %8 = arith.maximumf %5, %7 : vector<8x128xf32>
    %cst = arith.constant 0.000000e+00 : f32
    %9 = vector.broadcast %cst : f32 to vector<8x128xf32>
    %cst_7 = arith.constant 0.000000e+00 : f32
    %10 = vector.broadcast %cst_7 : f32 to vector<8x128xf32>
    %cst_8 = arith.constant 0.000000e+00 : f32
    %11 = vector.broadcast %cst_8 : f32 to vector<8x128xf32>
    %cst_9 = arith.constant 0.000000e+00 : f32
    %12 = vector.broadcast %cst_9 : f32 to vector<8x128xf32>
    %13 = arith.subf %5, %8 : vector<8x128xf32>
    %14 = math.exp %13 : vector<8x128xf32>
    %15 = arith.addf %9, %14 : vector<8x128xf32>
    %c0_i32_10 = arith.constant 0 : i32
    %16 = vector.broadcast %c0_i32_10 : i32 to vector<8x128xi32>
    %17 = arith.cmpi eq, %3, %16 : vector<8x128xi32>
    %18 = arith.select %17, %5, %10 : vector<8x128xi1>, vector<8x128xf32>
    %19 = arith.select %17, %14, %11 : vector<8x128xi1>, vector<8x128xf32>
    %c0_11 = arith.constant 0 : index
    %20 = memref.load %arg2[%c0_11] : memref<2xf32, #tpu.memory_space<smem>>
    %21 = vector.broadcast %20 : f32 to vector<8x128xf32>
    %22 = arith.select %17, %21, %12 : vector<8x128xi1>, vector<8x128xf32>
    %23 = arith.subf %7, %8 : vector<8x128xf32>
    %24 = math.exp %23 : vector<8x128xf32>
    %25 = arith.addf %15, %24 : vector<8x128xf32>
    %c1_i32 = arith.constant 1 : i32
    %26 = vector.broadcast %c1_i32 : i32 to vector<8x128xi32>
    %27 = arith.cmpi eq, %3, %26 : vector<8x128xi32>
    %28 = arith.select %27, %7, %18 : vector<8x128xi1>, vector<8x128xf32>
    %29 = arith.select %27, %24, %19 : vector<8x128xi1>, vector<8x128xf32>
    %c1_12 = arith.constant 1 : index
    %30 = memref.load %arg2[%c1_12] : memref<2xf32, #tpu.memory_space<smem>>
    %31 = vector.broadcast %30 : f32 to vector<8x128xf32>
    %32 = arith.select %27, %31, %22 : vector<8x128xi1>, vector<8x128xf32>
    %33 = tpu.reciprocal %25 {approx = true} : vector<8x128xf32> -> vector<8x128xf32>
    %34 = arith.mulf %29, %33 : vector<8x128xf32>
    %35 = arith.subf %28, %8 : vector<8x128xf32>
    %36 = math.log %25 : vector<8x128xf32>
    %37 = arith.subf %35, %36 : vector<8x128xf32>
    %cst_13 = arith.constant 1.000000e+00 : f32
    %38 = vector.broadcast %cst_13 : f32 to vector<8x128xf32>
    %39 = arith.subf %38, %34 : vector<8x128xf32>
    %cst_14 = arith.constant 0.000000e+00 : f32
    %40 = vector.broadcast %cst_14 : f32 to vector<8x128xf32>
    %41 = arith.maximumf %39, %40 : vector<8x128xf32>
    %42 = arith.mulf %41, %41 : vector<8x128xf32>
    %43 = arith.mulf %32, %42 : vector<8x128xf32>
    %cst_15 = arith.constant 0.000000e+00 : f32
    %44 = vector.broadcast %cst_15 : f32 to vector<8x128xf32>
    %45 = arith.subf %44, %37 : vector<8x128xf32>
    %46 = arith.mulf %43, %45 : vector<8x128xf32>
    %c0_16 = arith.constant 0 : index
    %c0_17 = arith.constant 0 : index
    %47 = vector.load %arg5[%c0_16, %c0_17] : memref<8x128xf32, #tpu.memory_space<vmem>>, vector<8x128xf32>
    %48 = vector.shape_cast %46 : vector<8x128xf32> to vector<1x8x128xf32>
    %cst_18 = arith.constant dense<0.000000e+00> : vector<8x128xf32>
    %49 = vector.multi_reduction <add>, %48, %cst_18 [0] : vector<1x8x128xf32> to vector<8x128xf32>
    %50 = arith.addf %47, %49 : vector<8x128xf32>
    %c0_19 = arith.constant 0 : index
    %c0_20 = arith.constant 0 : index
    %51 = vector.load %arg5[%c0_19, %c0_20] : memref<8x128xf32, #tpu.memory_space<vmem>>, vector<8x128xf32>
    tpu.vector_store %arg5[%c0_19, %c0_20], %50 {strides = array<i32>} : memref<8x128xf32, #tpu.memory_space<vmem>>, vector<8x128xf32>,
    return
  }
  func.func @transform_0(%arg0: i32, %arg1: i32, %arg2: memref<2xf32, #tpu.memory_space<smem>>) -> (i32, i32, i32) {
    %c1_i32 = arith.constant 1 : i32
    %0 = arith.muli %arg0, %c1_i32 : i32
    %1 = arith.addi %0, %arg1 : i32
    %c0_i32 = arith.constant 0 : i32
    %c0_i32_0 = arith.constant 0 : i32
    %c0_i32_1 = arith.constant 0 : i32
    return %c0_i32, %1, %c0_i32_0 : i32, i32, i32
  }
  func.func @transform_1(%arg0: i32, %arg1: i32, %arg2: memref<2xf32, #tpu.memory_space<smem>>) -> (i32, i32) {
    %c1_i32 = arith.constant 1 : i32
    %0 = arith.muli %arg0, %c1_i32 : i32
    %1 = arith.addi %0, %arg1 : i32
    %c0_i32 = arith.constant 0 : i32
    %c0_i32_0 = arith.constant 0 : i32
    return %1, %c0_i32 : i32, i32
  }
  func.func @transform_2(%arg0: i32, %arg1: i32, %arg2: memref<2xf32, #tpu.memory_space<smem>>) -> (i32, i32) {
    %c0_i32 = arith.constant 0 : i32
    %c0_i32_0 = arith.constant 0 : i32
    return %arg0, %c0_i32 : i32, i32
  }
}

</mosaic_0001>

<bundles_post_ra>
// kernel: tpu_custom_call.1
= control target key start
LH: loop header
LB: loop body
LE: loop exit
PB: predicated region body
PF: predicated region fallthrough
CT: control target
= control target key end

     0   :  { %s903_s0 = inlined_call_operand.hbm [shape: f32[2], index: 0, kind: input, shape index: {}]   ;;  %s904_s1 = inlined_call_operand.hbm [shape: f32[2,16,128], index: 1, kind: input, shape index: {}]   ;;  %s905_s2 = inlined_call_operand.hbm [shape: s32[16,128], index: 2, kind: input, shape index: {}]   ;;  %s906_s3 = inlined_call_operand.hbm [shape: f32[16,128], index: 3, kind: output, shape index: {}]  }
   0x1   :  { %s484_s14 = scalar_lea.hbm %s903_s0, 16 }
   0x2   :  { %p485_p0 = scmp.ne.s32.totalorder %s903_s0, %s484_s14  ;;  %p488_p1 = scmp.lt.u32.totalorder %s484_s14, %s903_s0 }
   0x4   :  { %p490_p2 = pnand %p488_p1, %p485_p0 }
   0x6   :  { %493 = shalt.err (!%p490_p2)  }
   0x7   :  { %s644_s19 = smov [#allocation3]  }
   0x8   :  { %9 = dma.hbm_to_smem %s903_s0, 16, %s644_s19, [#allocation2] }
   0x9   :  { %606 = dma.done.wait [#allocation2], 16 }
   0xa   :  { %607 = vsyncadd [#allocation2], 4294967280 }
   0xb   :  { %11 = sfence }
   0xc   :  { %12 = vsyncpa [#allocation5], 0 }
   0xd   :  { %14 = vsyncpa [#allocation5 + $0x1], 0 }
   0xe   :  { %15 = vsyncpa [#allocation8], 0 }
   0xf   :  { %17 = vsyncpa [#allocation8 + $0x1], 0 }
  0x10   :  { %18 = vsyncpa [#allocation6], 0 }
  0x11   :  { %20 = vsyncpa [#allocation6 + $0x1], 0  ;;  %s683_s22 = smov 0   ;;  %s685_s23 = smov 0  }
  0x12   :  { %s687_s24 = smov 0   ;;  %s689_s25 = smov 0  }
  0x13   :  { %s691_s26 = smov 0   ;;  %s693_s0 = smov 0  }
  0x14 LB: > { %s386_s27 = sadd.s32 4294967295, %s642_s0   ;;  %s387_s28 = sadd.s32 4294967294, %s642_s0   ;;  %s642_s0 = sphi %s693_s0, %s26_s0   ;;  %s638_s26 = sphi %s691_s26, %s924_s26   ;;  %s634_s25 = sphi %s689_s25, %s923_s25   ;;  %s630_s24 = sphi %s687_s24, %s922_s24   ;;  %s626_s23 = sphi %s685_s23, %s921_s23   ;;  %s622_s22 = sphi %s683_s22, %s920_s22  }
  0x15   : > { %s38_s29 = sadd.s32 1, %s638_s26  ;;  %s47_s30 = sadd.s32 1, %s630_s24 }
  0x16   : > { %p40_p3 = scmp.ge.s32.totalorder %s38_s29, 2  ;;  %p54_p4 = scmp.ne.s32.totalorder %s630_s24, %s626_s23 }
  0x17   : > { %p55_p5 = scmp.eq.s32.totalorder %s642_s0, 0  ;;  %p60_p6 = scmp.ne.s32.totalorder %s626_s23, %s622_s22 }
  0x18   : > { %s926_s29 = smov (%p40_p3, %s38_s29), 0  ;;  %p61_p8 = scmp.eq.s32.totalorder %s386_s27, 0 }
  0x19   : > { %p724_p7 = por %p55_p5, %p54_p4  ;;  %s44_s5 = ssub.s32 %s638_s26, %s926_s29 }
  0x1a   : > { %p112_p9 = scmp.eq.s32.totalorder %s386_s27, 1  ;;  %p45_p10 = scmp.eq.s32.totalorder %s44_s5, 0 }
  0x1b   : > { %p730_p11 = por %p61_p8, %p60_p6  ;;  %p118_p13 = scmp.eq.s32.totalorder %s387_s28, 1 }
  0x1c   : > { %p734_p12 = por %p112_p9, %p54_p4  ;;  %p421_p2 = scmp.lt.s32.totalorder %s642_s0, 2 }
  0x1d   : > { %s910_s6 = scalar_select %p730_p11, 1, 0 }
  0x1e   : > { %s911_s7 = scalar_select %p734_p12, 1, 0 }
  0x1f   : > { %s739_s8 = scalar_select %p45_p10, %s630_s24, %s47_s30  }
  0x20   : > { %p741_p0 = por %p118_p13, %p60_p6  ;;  %s748_s10 = sand.u32 1, %s630_s24  }
  0x21   : > { %s390_s11 = sshll.u32 %s748_s10, 4  ;;  %s391_s12 = sshll.u32 %s638_s26, 7 }
  0x22   : > { %s912_s9 = scalar_select %p741_p0, 1, 0 }
  0x23   : > { %s757_s15 = scalar_lea.hbm %s904_s1, %s391_s12  ;;  %s142_s16 = scalar_lea.vmem [#allocation4], %s390_s11 }
  0x24   : > { %s149_s17 = sshll.u32 %s142_s16, 4  ;;  %p763_p3 = pnand %p421_p2, %p724_p7  ;;  %s759_s17 = int_to_ptr.vmem [resolvable:$true] %s149_s17 }
  0x25   : > { %s139_s19 = scalar_lea.sflag [#allocation5], %s748_s10  ;;  %s494_s20 = scalar_lea.hbm %s757_s15, 256 }
  0x26   : > { %p495_p4 = scmp.ne.s32.totalorder %s757_s15, %s494_s20  ;;  %p496_p5 = pneg %p763_p3 }
  0x27   : > { %s499_s28 = scalar_lea.hbm %s904_s1, 512  ;;  %p500_p7 = scmp.lt.u32.totalorder %s757_s15, %s904_s1 }
  0x28   : > { %p497_p6 = pnand %p496_p5, %p495_p4  ;;  %p501_p9 = scmp.lt.u32.totalorder %s499_s28, %s494_s20 }
  0x29   : > { %p503_p13 = scmp.lt.u32.totalorder %s494_s20, %s757_s15 }
  0x2a   : > { %p498_p8 = pneg %p497_p6  ;;  %p502_p10 = por %p501_p9, %p500_p7 }
  0x2c   : > { %p504_p2 = por %p503_p13, %p502_p10 }
  0x2e   : > { %p505_p1 = pnand %p504_p2, %p498_p8 }
  0x30   : > { %508 = shalt.err (!%p505_p1)
}
  0x31   : > { %s509_s5 = scalar_lea.vmem %s759_s17, 256  ;;  %s645_s11 = smov [#allocation4]  }
  0x32   : > { %p510_p4 = scmp.ne.s32.totalorder %s759_s17, %s509_s5  ;;  %s514_s13 = sshll.u32 %s645_s11, 4  ;;  %s515_s13 = int_to_ptr.vmem [resolvable:$false] %s514_s13 }
  0x33   : > { %s516_s14 = scalar_lea.vmem %s515_s13, 512  ;;  %p517_p12 = scmp.lt.s32.totalorder %s759_s17, %s515_s13 }
  0x34   : > { %p512_p6 = pnand %p510_p4, %p496_p5  ;;  %p518_p7 = scmp.lt.s32.totalorder %s516_s14, %s509_s5 }
  0x36   : > { %p513_p0 = pneg %p512_p6  ;;  %p519_p9 = por %p518_p7, %p517_p12 }
  0x38   : > { %p520_p10 = pnand %p519_p9, %p513_p0 }
  0x3a   : > { %523 = shalt.err (!%p520_p10)
}
  0x3b   : > { %s646_s16 = smov 256   ;;  %s647_s20 = smov 128  }
  0x3c   : > { %s648_s21 = smov 8   ;;  %p394_p1 = scmp.ge.s32.totalorder %s642_s0, 1 }
  0x3d   : > { %413 = dma.hbm_to_vmem [thread:$0]  (!%p763_p3), %s757_s15, 256, %s759_s17, %s139_s19, %s646_s16, %s647_s20, %s648_s21  }
  0x3e   : > { %p176_p12 = scmp.lt.s32.totalorder %s642_s0, 3  ;;  %s392_s27 = sshll.u32 %s748_s10, 3 }
  0x3f   : > { %s807_s5 = scalar_lea.hbm %s905_s2, %s391_s12  ;;  %s163_s11 = scalar_lea.vmem [#allocation7], %s392_s27 }
  0x40   : > { %p798_p0 = pnand %p394_p1, %p176_p12  ;;  %s171_s13 = sshll.u32 %s163_s11, 4  ;;  %s172_s13 = int_to_ptr.vmem [resolvable:$true] %s171_s13 }
  0x41   : > { %s160_s15 = scalar_lea.sflag [#allocation8], %s748_s10  ;;  %s524_s17 = scalar_lea.hbm %s807_s5, 128 }
  0x42   : > { %s914_s28 = scalar_select %p798_p0, 1, 0 }
  0x43   : > { %p525_p8 = scmp.ne.s32.totalorder %s807_s5, %s524_s17  ;;  %s529_s16 = scalar_lea.hbm %s905_s2, 256 }
  0x44   : > { %p530_p4 = scmp.lt.u32.totalorder %s807_s5, %s905_s2  ;;  %p531_p6 = scmp.lt.u32.totalorder %s529_s16, %s524_s17 }
  0x45   : > { %p527_p13 = pnand %p525_p8, %p496_p5  ;;  %p533_p9 = scmp.lt.u32.totalorder %s524_s17, %s807_s5 }
  0x46   : > { %p532_p7 = por %p531_p6, %p530_p4 }
  0x47   : > { %p528_p2 = pneg %p527_p13 }
  0x48   : > { %p534_p10 = por %p533_p9, %p532_p7 }
  0x4a   : > { %p535_p1 = pnand %p534_p10, %p528_p2 }
  0x4c   : > { %538 = shalt.err (!%p535_p1)
}
  0x4d   : > { %s539_s10 = scalar_lea.vmem %s172_s13, 128  ;;  %s649_s21 = smov [#allocation7]  }
  0x4e   : > { %p540_p12 = scmp.ne.s32.totalorder %s172_s13, %s539_s10  ;;  %s544_s27 = sshll.u32 %s649_s21, 4  ;;  %s545_s27 = int_to_ptr.vmem [resolvable:$false] %s544_s27 }
  0x4f   : > { %s546_s30 = scalar_lea.vmem %s545_s27, 256  ;;  %p547_p11 = scmp.lt.s32.totalorder %s172_s13, %s545_s27 }
  0x50   : > { %p542_p8 = pnand %p540_p12, %p496_p5  ;;  %p548_p0 = scmp.lt.s32.totalorder %s546_s30, %s539_s10 }
  0x52   : > { %p543_p13 = pneg %p542_p8  ;;  %p549_p4 = por %p548_p0, %p547_p11 }
  0x54   : > { %p550_p6 = pnand %p549_p4, %p543_p13 }
  0x56   : > { %553 = shalt.err (!%p550_p6)
}
  0x57   : > { %416 = dma.hbm_to_vmem [thread:$0]  (!%p763_p3), %s807_s5, 128, %s172_s13, %s160_s15  }
  0x58   : > { %p915_p2 = scmp.ne.s32.totalorder %s914_s28, 0 }
  0x59   : > { %s832_s4 = sand.u32 (!%p915_p2), 1, %s626_s23   ;;  %p916_p5 = scmp.ne.s32.totalorder (!%p915_p2), %s910_s6, 0 }
  0x5a   : > { %180 = sbr.rel (%p915_p2) target bundleno = 159 (0x9f), region = 28  ;;  %s395_s11 = sshll.u32 (!%p915_p2), %s832_s4, 4 }
  0x5b   : > { %s183_s17 = scalar_lea.sflag (!%p915_p2), [#allocation5], %s832_s4  ;;  %s186_s19 = scalar_lea.vmem (!%p915_p2), [#allocation4], %s395_s11 }
  0x61   : > { %609 = dma.done.wait (%p916_p5), %s183_s17, 256  }
  0x62   : > { %611 = vsyncadd (%p916_p5), %s183_s17, 4294967040  ;;  %s396_s18 = sshll.u32 %s832_s4, 3  ;;  %s192_s28 = scalar_lea.sflag [#allocation8], %s832_s4 }
  0x63   : > { %s195_s5 = scalar_lea.vmem [#allocation7], %s396_s18 }
  0x64   : > { %613 = dma.done.wait (%p916_p5), %s192_s28, 128  }
  0x65   : > { %615 = vsyncadd (%p916_p5), %s192_s28, 4294967168  ;;  %v229_v0 = vld [vmem:[%s186_s19] sm:$0xff]  ;;  %v398_v1 = vld [vmem:[%s186_s19 + $0x8] sm:$0xff]  ;;  %s240_s13 = sld [smem:[#allocation3]]  ;;  %s399_s6 = sld [smem:[#allocation3 + $0x1]] }
  0x66   : > { %v232_v2 = vmax.f32 %v229_v0, %v398_v1  ;;  %v228_v10 = vld [vmem:[%s195_s5] sm:$0xff]  ;;  %s401_s15 = sshll.u32 %s634_s25, 7  ;;  %s220_s14 = scalar_lea.vmem [#allocation9], %s396_s18 }
  0x67   : > { %vm237_vm0 = vcmp.eq.s32.totalorder %v228_v10, 0  ;;  %vm247_vm1 = vcmp.eq.s32.totalorder %v228_v10, 1  ;;  %s283_s16 = sshll.u32 %s220_s14, 4  ;;  %s854_s10 = scalar_lea.hbm %s906_s3, %s401_s15  ;;  %s856_s16 = int_to_ptr.vmem [resolvable:$true] %s283_s16 }
  0x68   : > { %v233_v3 = vsub.f32 %v229_v0, %v232_v2  ;;  %v243_v4 = vsub.f32 %v398_v1, %v232_v2  ;;  %v238_v11 = vsel %vm237_vm0, %v229_v0, 0.0  ;;  %s270_s21 = scalar_lea.sflag [#allocation6], %s832_s4  ;;  %s554_s27 = scalar_lea.vmem %s856_s16, 128 }
  0x69   : > { %v248_v13 = vsel %vm247_vm1, %v398_v1, %v238_v11  ;;  %p555_p11 = scmp.ne.s32.totalorder %s856_s16, %s554_s27  ;;  %p917_p3 = scmp.ne.s32.totalorder %s911_s7, 0 }
  0x6a   : > { %v234_v5 = vmul.f32 1.442695, %v233_v3  ;;  %v244_v6 = vmul.f32 1.442695, %v243_v4  ;;  %v255_v17 = vsub.f32 %v248_v13, %v232_v2  ;;  %s650_s25 = smov [#allocation9]  }
  0x6b   : > { %v241_v16 = vstv %s240_s13  ;;  %v251_v22 = vstv %s399_s6  ;;  %p556_p0 = pnand %p555_p11, %p917_p3  ;;  %s558_s30 = sshll.u32 %s650_s25, 4  ;;  %s559_s30 = int_to_ptr.vmem [resolvable:$false] %s558_s30 }
  0x6c   : > { %476 = vpow2.f32 %v234_v5  ;;  %v242_v21 = vsel %vm237_vm0, %v241_v16, 0.0  ;;  %s560_s11 = scalar_lea.vmem %s559_s30, 256  ;;  %p561_p9 = scmp.lt.s32.totalorder %s856_s16, %s559_s30 }
  0x6d   : > { %478 = vpow2.f32 %v244_v6  ;;  %v252_v26 = vsel %vm247_vm1, %v251_v22, %v242_v21  ;;  %p557_p7 = pneg %p556_p0  ;;  %p562_p10 = scmp.lt.s32.totalorder %s560_s11, %s554_s27 }
  0x6f   : > { %p563_p1 = por %p562_p10, %p561_p9 }
  0x71   : > { %p564_p12 = pnand %p563_p1, %p557_p7 }
  0x76   : > { %v477_v7 = vpop.eup %476 }
  0x77   : > { %v479_v8 = vpop.eup %478  ;;  %v239_v12 = vsel %vm237_vm0, %v477_v7, 0.0 }
  0x78   : > { %v246_v9 = vadd.f32 %v479_v8, %v477_v7  ;;  %v249_v14 = vsel %vm247_vm1, %v479_v8, %v239_v12 }
  0x7a   : > { %480 = vrcp.f32 %v246_v9 }
  0x7b   : > { %482 = vlog2.f32 %v246_v9 }
  0x84   : > { %v481_v15 = vpop.eup %480 }
  0x85   : > { %v483_v18 = vpop.eup %482  ;;  %v254_v19 = vmul.f32 %v481_v15, %v249_v14 }
  0x86   : > { %v257_v20 = vmul.f32 0.6931472, %v483_v18 }
  0x87   : > { %v259_v23 = vsub.f32 1.0, %v254_v19 }
  0x88   : > { %v258_v24 = vsub.f32 %v255_v17, %v257_v20 }
  0x89   : > { %v260_v25 = vmax.f32 %v259_v23, 0.0 }
  0x8a   : > { %v263_v28 = vsub.f32 0.0, %v258_v24 }
  0x8b   : > { %v261_v27 = vmul.f32 %v260_v25, %v260_v25 }
  0x8d   : > { %v262_v29 = vmul.f32 %v261_v27, %v252_v26 }
  0x8f   : > { %v264_v30 = vmul.f32 %v263_v28, %v262_v29 }
  0x91   : > { %268 = vst [vmem:[%s220_s14] sm:$0xff] %v264_v30 }
  0x92   : > { %567 = shalt.err (!%p564_p12)
}
  0x93   : > { %s568_s4 = scalar_lea.hbm %s854_s10, 128  ;;  %s572_s18 = scalar_lea.hbm %s906_s3, 256 }
  0x94   : > { %p569_p8 = scmp.ne.s32.totalorder %s854_s10, %s568_s4  ;;  %p573_p6 = scmp.lt.u32.totalorder %s854_s10, %s906_s3 }
  0x95   : > { %p574_p2 = scmp.lt.u32.totalorder %s572_s18, %s568_s4  ;;  %p576_p11 = scmp.lt.u32.totalorder %s568_s4, %s854_s10 }
  0x96   : > { %p570_p13 = pnand %p569_p8, %p917_p3 }
  0x97   : > { %p575_p5 = por %p574_p2, %p573_p6 }
  0x98   : > { %p571_p4 = pneg %p570_p13 }
  0x99   : > { %p577_p0 = por %p576_p11, %p575_p5 }
  0x9b   : > { %p578_p7 = pnand %p577_p0, %p571_p4 }
  0x9d   : > { %581 = shalt.err (!%p578_p7)
}
  0x9e   : > { %408 = dma.vmem_to_hbm [thread:$0]  (%p917_p3), %s856_s16, 128, %s854_s10, %s270_s21  }
  0x9f PF: > { %s295_s13 = sand.u32 1, %s622_s22   ;;  %p918_p9 = scmp.ne.s32.totalorder %s912_s9, 0 }
  0xa0   : > { %p919_p10 = scmp.ge.s32.totalorder %s642_s0, 2  ;;  %s296_s6 = scalar_lea.sflag [#allocation6], %s295_s13 }
  0xa2   : > { %p418_p1 = pnand %p919_p10, %p918_p9 }
  0xa4   : > { %617 = dma.done.wait (!%p418_p1), %s296_s6, 128  }
  0xa5   : > { %619 = vsyncadd (!%p418_p1), %s296_s6, 4294967168  ;;  %s26_s0 = sadd.s32 1, %s642_s0   ;;  %s920_s22 = smov %s626_s23 }
  0xa6   : > { %p23_p12 = scmp.ge.s32.totalorder %s26_s0, 4   ;;  %s921_s23 = smov %s630_s24 }
  0xa7   : > { %s922_s24 = smov %s739_s8  ;;  %s923_s25 = smov %s638_s26 }
  0xa8   : > { %s924_s26 = smov %s926_s29  ;;  %25 = sbr.rel (!%p23_p12) target bundleno = 20 (0x14), region = 91 }
  0xaf   :  { %301 = vsyncpa [#allocation5], 1 }
  0xb0   :  { %303 = vsyncpa [#allocation5 + $0x1], 1 }
  0xb1   :  { %304 = vsyncpa [#allocation8], 1 }
  0xb2   :  { %306 = vsyncpa [#allocation8 + $0x1], 1 }
  0xb3   :  { %307 = vsyncpa [#allocation6], 1 }
  0xb4   :  { %309 = vsyncpa [#allocation6 + $0x1], 1 }

</bundles_post_ra>
